<compile_context>
chip_gen: v7x
topology: tpu7x:2x2x1
jax: 0.10.0
libtpu: 0.0.40
codegen_flags: <defaults>
</compile_context>

<pallas_src>
import functools

import jax
import jax.numpy as jnp
from jax.experimental import pallas as pl
from jax.experimental.pallas import tpu as pltpu


def _decomp_kernel(x_ref, res_ref, mean_ref, *, kernel_size, front_pad, end_pad):
    """One (TB, L, TC) tile: in-register replicate pad, sliding mean, residual."""
    x = x_ref[...]                          # single read of the DMA'd tile
    TB, L, TC = x.shape
    xf = x.astype(jnp.float32)              # one up-front cast (not per tap)

    if kernel_size == 1:
        mean = xf
    else:
        # Replicate-padded series built once in registers.  Edge blocks are
        # rounded up to a multiple of 8 rows so the concatenate stays
        # sublane-aligned; the surplus rows are never addressed by any window.
        pad_l = -(-front_pad // 8) * 8 if front_pad else 0
        pad_r = -(-end_pad // 8) * 8 if end_pad else 0
        pieces = []
        if pad_l:
            pieces.append(jnp.broadcast_to(xf[:, 0:1, :], (TB, pad_l, TC)))
        pieces.append(xf)
        if pad_r:
            pieces.append(jnp.broadcast_to(xf[:, L - 1:L, :], (TB, pad_r, TC)))
        padded = jnp.concatenate(pieces, axis=1) if len(pieces) > 1 else xf

        # Window sum: start from the centre tap (already in registers as xf)
        # and add the k-1 shifted taps, each a static slice of the in-register
        # padded value -- no VMEM scratch store, no reloads.
        # TODO(synk): for large kernel_size (Autoformer's k=25) switch to a
        # log-step prefix sum or a folded (L, L) averaging-matrix matmul on the
        # otherwise-idle MXU instead of the unrolled k-term sum.
        acc = xf
        for t in range(kernel_size):
            if t == front_pad:
                continue
            start = pad_l - front_pad + t
            acc = acc + padded[:, start:start + L, :]
        mean = acc * (1.0 / kernel_size)

    mean_ref[...] = mean.astype(mean_ref.dtype)
    res_ref[...] = (xf - mean).astype(res_ref.dtype)


def _step_bytes(tb, tc, L, itemsize):
    # x/res/mean double-buffered by the pipeline (input dtype) plus ~5 f32
    # tile-sized intermediates (xf, padded, acc, temporaries).
    return 3 * 2 * tb * L * tc * itemsize + 5 * tb * L * tc * 4


def _vmem_budget_bytes():
    """Per-step VMEM budget + physical capacity for the local TPU generation."""
    try:
        cap = int(pltpu.get_tpu_info().vmem_capacity_bytes)
    except Exception:  # conservative fallback: v7x per-TensorCore VMEM
        cap = 64 * 1024 * 1024
    # ~1/8 of physical VMEM per pipelined step: ~16 MiB on v5e/v6e (128 MiB),
    # ~8 MiB on v7x (64 MiB) -- big enough to approach the HBM roofline while
    # staying clear of the scoped-VMEM limit with double buffering.
    return max(cap // 8, 4 * 1024 * 1024), cap


def _choose_tiles(B, L, C, itemsize, budget_bytes):
    """Pick (TB, TC) fitting the VMEM budget; keep >= 2 grid steps for v7x."""
    # Lane tile: full C unless C is a large multiple of 128 we can split evenly
    # (a full-dim block always satisfies the (8, 128) rule).
    TC = C
    if C % 128 == 0 and C > 512:
        for cand in range(512, 127, -128):
            if C % cand == 0:
                TC = cand
                break

    TB = 1
    for cand in range(min(B, 8), 0, -1):
        if B % cand == 0 and _step_bytes(cand, TC, L, itemsize) <= budget_bytes:
            TB = cand
            break
    # TODO(synk): add an L-tiled (k-1 halo) fallback for huge L with a
    # non-128-multiple C, where even a TB=1 step would exceed the budget.

    # v7x has two TensorCores: ensure at least two grid steps exist along a
    # "parallel" axis whenever the problem allows it.
    if (B // TB) * (C // TC) < 2:
        if TB > 1:
            for cand in range(TB // 2, 0, -1):
                if B % cand == 0:
                    TB = cand
                    break
        elif C % 256 == 0:
            TC = C // 2
    return TB, TC


def series_decomp(x, kernel_size):
    """x: (B, L, C) float array. Returns (res, moving_mean), each (B, L, C)."""
    B, L, C = x.shape
    front_pad = (kernel_size - 1) // 2
    end_pad = kernel_size - 1 - front_pad
    itemsize = jnp.dtype(x.dtype).itemsize

    budget, vmem_cap = _vmem_budget_bytes()
    TB, TC = _choose_tiles(B, L, C, itemsize, budget)
    grid = (B // TB, C // TC)

    kernel = functools.partial(
        _decomp_kernel,
        kernel_size=kernel_size, front_pad=front_pad, end_pad=end_pad)

    cost = pl.CostEstimate(
        flops=int((kernel_size + 1) * B * L * C),
        transcendentals=0,
        bytes_accessed=int(3 * B * L * C * itemsize),  # 1 read + 2 writes
    )

    step = _step_bytes(TB, TC, L, itemsize)
    vmem_limit = int(min(vmem_cap * 3 // 4, max(32 * 1024 * 1024, 2 * step)))

    # TODO(synk): for very small C (e.g. Autoformer enc_in=7) a lane-dense
    # layout (window over lanes / batch folded into lanes) would avoid masked
    # stores on the outputs; kept (B, L, C) here to stay 1:1 with the module.
    res, mean = pl.pallas_call(
        kernel,
        out_shape=(
            jax.ShapeDtypeStruct((B, L, C), x.dtype),
            jax.ShapeDtypeStruct((B, L, C), x.dtype),
        ),
        grid_spec=pltpu.PrefetchScalarGridSpec(
            num_scalar_prefetch=0,
            grid=grid,
            in_specs=[pl.BlockSpec((TB, L, TC), lambda b, c: (b, 0, c))],
            out_specs=[
                pl.BlockSpec((TB, L, TC), lambda b, c: (b, 0, c)),
                pl.BlockSpec((TB, L, TC), lambda b, c: (b, 0, c)),
            ],
        ),
        compiler_params=pltpu.CompilerParams(
            dimension_semantics=("parallel", "parallel"),
            vmem_limit_bytes=vmem_limit,
        ),
        cost_estimate=cost,
    )(x)
    return res, mean


def _reference(x, kernel_size):
    # Pure-JAX reference of the PyTorch forward for verification.
    front_pad = (kernel_size - 1) // 2
    end_pad = kernel_size - 1 - front_pad
    front = jnp.repeat(x[:, 0:1, :], front_pad, axis=1)
    end = jnp.repeat(x[:, -1:, :], end_pad, axis=1)
    xp = jnp.concatenate([front, x, end], axis=1)
    L = x.shape[1]
    windows = jnp.stack([xp[:, i:i + L, :] for i in range(kernel_size)], axis=0)
    mean = jnp.mean(windows, axis=0)
    return x - mean, mean


if __name__ == "__main__":
    kernel_size = 5  # series_decomp(kernel_size=5), stride=1
    B, L, C = 2, 8, 4

    key = jax.random.PRNGKey(0)
    x = jax.random.normal(key, (B, L, C), dtype=jnp.float32)

    res, mean = series_decomp(x, kernel_size)
    res = jax.block_until_ready(res)
    mean = jax.block_until_ready(mean)

    res_exp, mean_exp = _reference(x, kernel_size)
    assert jnp.allclose(mean, mean_exp, atol=1e-5, rtol=1e-5)
    assert jnp.allclose(res, res_exp, atol=1e-5, rtol=1e-5)

    print("KERNEL_OK")
</pallas_src>

<mosaic_0001>
module attributes {stable_mosaic.version = 11 : i64} {
  func.func @_decomp_kernel(%arg0: i32, %arg1: i32, %arg2: memref<1x8x4xf32, #tpu.memory_space<vmem>>, %arg3: memref<1x8x4xf32, #tpu.memory_space<vmem>>, %arg4: memref<1x8x4xf32, #tpu.memory_space<vmem>>) attributes {dimension_semantics = [#tpu.dimension_semantics<parallel>, #tpu.dimension_semantics<parallel>], iteration_bounds = array<i64: 2, 1>, scalar_prefetch = 0 : i64, scratch_operands = 0 : i64, tpu.core_type = #tpu.core_type<tc>, window_params = [{transform_indices = @transform_0, window_bounds = array<i64: 1, 8, 4>}, {transform_indices = @transform_1, window_bounds = array<i64: 1, 8, 4>}, {transform_indices = @transform_2, window_bounds = array<i64: 1, 8, 4>}]} {
    %c0 = arith.constant 0 : index
    %c0_0 = arith.constant 0 : index
    %c0_1 = arith.constant 0 : index
    %0 = vector.load %arg2[%c0, %c0_0, %c0_1] : memref<1x8x4xf32, #tpu.memory_space<vmem>>, vector<1x8x4xf32>
    %1 = vector.extract_strided_slice %0 {offsets = [0, 0, 0], sizes = [1, 1, 4], strides = [1, 1, 1]} : vector<1x8x4xf32> to vector<1x1x4xf32>
    %2 = vector.shape_cast %1 : vector<1x1x4xf32> to vector<1x1x4xf32>
    %3 = vector.broadcast %2 : vector<1x1x4xf32> to vector<1x8x4xf32>
    %4 = vector.extract_strided_slice %0 {offsets = [0, 7, 0], sizes = [1, 1, 4], strides = [1, 1, 1]} : vector<1x8x4xf32> to vector<1x1x4xf32>
    %5 = vector.shape_cast %4 : vector<1x1x4xf32> to vector<1x1x4xf32>
    %6 = vector.broadcast %5 : vector<1x1x4xf32> to vector<1x8x4xf32>
    %7 = tpu.concatenate %3, %0, %6 in 1 : vector<1x8x4xf32>, vector<1x8x4xf32>, vector<1x8x4xf32> -> vector<1x24x4xf32>
    %8 = vector.extract_strided_slice %7 {offsets = [0, 6, 0], sizes = [1, 8, 4], strides = [1, 1, 1]} : vector<1x24x4xf32> to vector<1x8x4xf32>
    %9 = arith.addf %0, %8 : vector<1x8x4xf32>
    %10 = vector.extract_strided_slice %7 {offsets = [0, 7, 0], sizes = [1, 8, 4], strides = [1, 1, 1]} : vector<1x24x4xf32> to vector<1x8x4xf32>
    %11 = arith.addf %9, %10 : vector<1x8x4xf32>
    %12 = vector.extract_strided_slice %7 {offsets = [0, 9, 0], sizes = [1, 8, 4], strides = [1, 1, 1]} : vector<1x24x4xf32> to vector<1x8x4xf32>
    %13 = arith.addf %11, %12 : vector<1x8x4xf32>
    %14 = vector.extract_strided_slice %7 {offsets = [0, 10, 0], sizes = [1, 8, 4], strides = [1, 1, 1]} : vector<1x24x4xf32> to vector<1x8x4xf32>
    %15 = arith.addf %13, %14 : vector<1x8x4xf32>
    %cst = arith.constant 2.000000e-01 : f32
    %16 = vector.broadcast %cst : f32 to vector<1x8x4xf32>
    %17 = arith.mulf %15, %16 : vector<1x8x4xf32>
    %c0_2 = arith.constant 0 : index
    %c0_3 = arith.constant 0 : index
    %c0_4 = arith.constant 0 : index
    %18 = vector.load %arg4[%c0_2, %c0_3, %c0_4] : memref<1x8x4xf32, #tpu.memory_space<vmem>>, vector<1x8x4xf32>
    tpu.vector_store %arg4[%c0_2, %c0_3, %c0_4], %17 {strides = array<i32>} : memref<1x8x4xf32, #tpu.memory_space<vmem>>, vector<1x8x4xf32>,
    %19 = arith.subf %0, %17 : vector<1x8x4xf32>
    %c0_5 = arith.constant 0 : index
    %c0_6 = arith.constant 0 : index
    %c0_7 = arith.constant 0 : index
    %20 = vector.load %arg3[%c0_5, %c0_6, %c0_7] : memref<1x8x4xf32, #tpu.memory_space<vmem>>, vector<1x8x4xf32>
    tpu.vector_store %arg3[%c0_5, %c0_6, %c0_7], %19 {strides = array<i32>} : memref<1x8x4xf32, #tpu.memory_space<vmem>>, vector<1x8x4xf32>,
    return
  }
  func.func @transform_0(%arg0: i32, %arg1: i32) -> (i32, i32, i32) {
    %c0_i32 = arith.constant 0 : i32
    %c0_i32_0 = arith.constant 0 : i32
    return %arg0, %c0_i32, %arg1 : i32, i32, i32
  }
  func.func @transform_1(%arg0: i32, %arg1: i32) -> (i32, i32, i32) {
    %c0_i32 = arith.constant 0 : i32
    %c0_i32_0 = arith.constant 0 : i32
    return %arg0, %c0_i32, %arg1 : i32, i32, i32
  }
  func.func @transform_2(%arg0: i32, %arg1: i32) -> (i32, i32, i32) {
    %c0_i32 = arith.constant 0 : i32
    %c0_i32_0 = arith.constant 0 : i32
    return %arg0, %c0_i32, %arg1 : i32, i32, i32
  }
}

</mosaic_0001>

<bundles_post_ra>
// kernel: tpu_custom_call.1
= control target key start
LH: loop header
LB: loop body
LE: loop exit
PB: predicated region body
PF: predicated region fallthrough
CT: control target
= control target key end

     0   :  { %s418_s9 = smov 0   ;;  %s420_s10 = smov 0   ;;  %s459_s0 = inlined_call_operand.vmem [shape: f32[2,8,4], index: 0, kind: input, shape index: {}]   ;;  %s460_s1 = inlined_call_operand.vmem [shape: f32[2,8,4], index: 1, kind: output, shape index: {0}]   ;;  %s461_s2 = inlined_call_operand.vmem [shape: f32[2,8,4], index: 2, kind: output, shape index: {1}]  }
   0x1   :  { %s422_s11 = smov 0  }
   0x2 LB: > { %s25_s12 = sadd.s32 1, %s397_s10  ;;  %p349_p0 = scmp.ge.s32.totalorder %s401_s11, 1  ;;  %s401_s11 = sphi %s422_s11, %s13_s11   ;;  %s397_s10 = sphi %s420_s10, %s463_s10   ;;  %s393_s9 = sphi %s418_s9, %s462_s9  }
   0x3   : > { %p27_p1 = scmp.ge.s32.totalorder %s25_s12, 2  ;;  %p135_p2 = scmp.lt.s32.totalorder %s401_s11, 3 }
   0x5   : > { %s465_s12 = smov (%p27_p1, %s25_s12), 0  ;;  %p136_p3 = pnand %p349_p0, %p135_p2 }
   0x6   : > { %p168_p4 = scmp.lt.s32.totalorder (!%p136_p3), %s393_s9, 1  ;;  %v190_v0 = vlaneseq (!%p136_p3)  ;;  %vm200_vm0 = vcmask (!%p136_p3), 1041408   ;;  %vm206_vm1 = vcmask (!%p136_p3), 1040384   ;;  %vm213_vm2 = vcmask (!%p136_p3), 1046528  }
   0x7   : > { %139 = sbr.rel (%p136_p3) target bundleno = 36 (0x24), region = 24  ;;  %vm219_vm3 = vcmask (!%p136_p3), 1045504   ;;  %vm226_vm4 = vcmask (!%p136_p3), 31744  }
   0x8   : > { %v191_v1 = vshrl.u32 (!%p136_p3), %v190_v0, 7 }
   0xa   : > { %v192_v2 = vsub.s32 (!%p136_p3), 0, %v191_v1  ;;  %v196_v3 = vsub.s32 (!%p136_p3), 7, %v191_v1 }
   0xe   : > { %s467_s9 = smov (!%p168_p4, %s393_s9), 1 }
   0xf   : > { %s436_s13 = sshll.u32 %s467_s9, 3 }
  0x10   : > { %s174_s16 = scalar_lea.vmem %s459_s0, %s436_s13  ;;  %s188_s19 = scalar_lea.vmem %s461_s2, %s436_s13 }
  0x11   : > { %v189_v4 = vld [vmem:[%s174_s16] sm:$0xff]  ;;  %s181_s22 = scalar_lea.vmem %s460_s1, %s436_s13 }
  0x12   : > { %v193_v5 = vrot.slane %v189_v4, %v192_v2  ;;  %v197_v6 = vrot.slane %v189_v4, %v196_v3  ;;  %v202_v7 = vrot.slane %v189_v4, 6  ;;  %v208_v8 = vrot.slane %v189_v4, 7 }
  0x13   : > { %v214_v11 = vrot.slane %v189_v4, 1  ;;  %v220_v15 = vrot.slane %v189_v4, 2 }
  0x14   : > { %v201_v9 = vrot.slane %v193_v5, 6  ;;  %v207_v10 = vrot.slane %v193_v5, 7  ;;  %v215_v12 = vrot.slane %v197_v6, 1  ;;  %v221_v16 = vrot.slane %v197_v6, 2 }
  0x16   : > { %v203_v13 = vsel %vm200_vm0, %v201_v9, %v202_v7  ;;  %v209_v14 = vsel %vm206_vm1, %v207_v10, %v208_v8  ;;  %v216_v18 = vsel %vm213_vm2, %v214_v11, %v215_v12  ;;  %v222_v20 = vsel %vm219_vm3, %v220_v15, %v221_v16 }
  0x17   : > { %v205_v17 = vadd.f32 %v203_v13, %v189_v4 }
  0x19   : > { %v211_v19 = vadd.f32 %v209_v14, %v205_v17 }
  0x1b   : > { %v218_v21 = vadd.f32 %v216_v18, %v211_v19 }
  0x1d   : > { %v224_v22 = vadd.f32 %v222_v20, %v218_v21 }
  0x1f   : > { %v225_v23 = vmul.f32 0.2, %v224_v22 }
  0x21   : > { %227 = vst.msk [vmem:[%s188_s19] sm:$0xff] %vm226_vm4, %v225_v23  ;;  %v228_v24 = vsub.f32 %v189_v4, %v225_v23 }
  0x23   : > { %229 = vst.msk [vmem:[%s181_s22] sm:$0xff] %vm226_vm4, %v228_v24 }
  0x24 PF: > { %s13_s11 = sadd.s32 1, %s401_s11   ;;  %s462_s9 = smov %s397_s10 }
  0x25   : > { %p10_p5 = scmp.ge.s32.totalorder %s13_s11, 4   ;;  %s463_s10 = smov %s465_s12 }
  0x27   :  { %12 = sbr.rel (!%p10_p5) target bundleno = 2 (0x2), region = 66 }

</bundles_post_ra>
